<compile_context>
chip_gen: v7x
topology: tpu7x:2x2x1
jax: 0.10.0
libtpu: 0.0.40
codegen_flags: <defaults>
</compile_context>

<pallas_src>
import functools

import jax
import jax.numpy as jnp
import numpy as np
from jax.experimental import pallas as pl
from jax.experimental.pallas import tpu as pltpu

IMAGENET_DEFAULT_MEAN = jnp.array([0.485, 0.456, 0.406], dtype=jnp.float32)
IMAGENET_DEFAULT_STD = jnp.array([0.229, 0.224, 0.225], dtype=jnp.float32)


# ----------------------------- helpers -----------------------------
def _sublane_multiple(dtype):
    # f32 -> 8 sublanes, bf16 -> 16, int8/fp8 -> 32.
    return max(8, 32 // jnp.dtype(dtype).itemsize)


def _round_up(a, b):
    return (a + b - 1) // b * b


def _pick_row_tile(num_rows, sub, target=1024):
    """Largest divisor of num_rows that is a multiple of `sub` and <= target."""
    if num_rows <= target or num_rows % sub != 0:
        return num_rows
    best = sub
    for d in range(sub, target + 1, sub):
        if num_rows % d == 0:
            best = d
    return best


def _project(p, mn, mx):
    """Clamp + 255-level quantization, in f32.

    The pre-floor arithmetic keeps the exact op order of the PyTorch module
    ((p - mn) / (mx - mn) * 255) so floor() boundaries match bit-for-bit; only the
    post-floor rescale is folded so the /255 is not a per-element divide.
    """
    rng = mx - mn
    p = jnp.maximum(jnp.minimum(p, mx), mn)
    q = jnp.floor((p - mn) / rng * 255.0)
    return q * (rng * (1.0 / 255.0)) + mn


# ----------------------------- kernels -----------------------------
def _add_kernel(x_ref, p_ref, mn_ref, mx_ref, o_ref):
    # x_ref/o_ref: (1, 1, r_tile, L) in x.dtype; p_ref: (1, r_tile, L) f32
    # mn_ref/mx_ref: (1, 1, 1) f32 (per-channel values selected by the grid's C axis)
    p = _project(p_ref[...], mn_ref[...], mx_ref[...])
    o_ref[...] = x_ref[...] + p.astype(x_ref.dtype)


def _paste_kernel(x_ref, p_ref, mn_ref, mx_ref, o_ref, *, w, h):
    # x_ref/o_ref: (1, C, wp, hp) aligned window covering the patch corner
    # p_ref: (C, w, h) f32 (unpadded patch); mn_ref/mx_ref: (C, 1, 1) f32
    p = _project(p_ref[...], mn_ref[...], mx_ref[...]).astype(o_ref.dtype)
    _, _, wp, hp = o_ref.shape
    if (wp, hp) == (w, h):
        o_ref[0] = p                      # window is exactly the patch
    else:
        o_ref[...] = x_ref[...]           # copy the aligned window ...
        o_ref[0, :, :w, :h] = p           # ... and overwrite the patch corner


# ----------------------------- wrappers -----------------------------
def _paste_forward(x, patch_chw, mn, mx, *, w, h):
    B, C, W, H = x.shape
    sub = _sublane_multiple(x.dtype)
    wp = min(W, _round_up(w, sub))
    hp = min(H, _round_up(h, 128))
    kernel = functools.partial(_paste_kernel, w=w, h=h)
    return pl.pallas_call(
        kernel,
        out_shape=jax.ShapeDtypeStruct((B, C, W, H), x.dtype),
        grid_spec=pltpu.PrefetchScalarGridSpec(
            num_scalar_prefetch=0,
            grid=(B,),
            in_specs=[
                pl.BlockSpec((1, C, wp, hp), lambda b: (b, 0, 0, 0)),
                pl.BlockSpec((C, w, h), lambda b: (0, 0, 0)),
                pl.BlockSpec((C, 1, 1), lambda b: (0, 0, 0)),
                pl.BlockSpec((C, 1, 1), lambda b: (0, 0, 0)),
            ],
            out_specs=pl.BlockSpec((1, C, wp, hp), lambda b: (b, 0, 0, 0)),
        ),
        # Output aliases the image: everything outside the patch window stays untouched,
        # so kernel HBM traffic is O(B*C*wp*hp) instead of O(B*C*W*H).
        input_output_aliases={0: 0},
        compiler_params=pltpu.CompilerParams(dimension_semantics=("parallel",)),
    )(x, patch_chw, mn, mx)


def _add_forward(x, patch_chw, mn, mx):
    B, C, W, H = x.shape
    if (W * H) % 128 == 0:
        R, L = (W * H) // 128, 128     # lane-dense layout: unmasked 128-lane stores
    else:
        R, L = W, H                    # fallback: natural (W, H) layout
    sub = _sublane_multiple(x.dtype)
    r_tile = _pick_row_tile(R, sub)
    xr = x.reshape(B, C, R, L)
    pr = patch_chw.reshape(C, R, L)
    grid = (C, R // r_tile, B)         # batch innermost -> patch block re-used across B
    out = pl.pallas_call(
        _add_kernel,
        out_shape=jax.ShapeDtypeStruct((B, C, R, L), x.dtype),
        grid_spec=pltpu.PrefetchScalarGridSpec(
            num_scalar_prefetch=0,
            grid=grid,
            in_specs=[
                pl.BlockSpec((1, 1, r_tile, L), lambda c, r, b: (b, c, r, 0)),
                pl.BlockSpec((1, r_tile, L), lambda c, r, b: (c, r, 0)),
                pl.BlockSpec((1, 1, 1), lambda c, r, b: (c, 0, 0)),
                pl.BlockSpec((1, 1, 1), lambda c, r, b: (c, 0, 0)),
            ],
            out_specs=pl.BlockSpec((1, 1, r_tile, L), lambda c, r, b: (b, c, r, 0)),
        ),
        compiler_params=pltpu.CompilerParams(
            dimension_semantics=("parallel", "parallel", "arbitrary")),
    )(xr, pr, mn, mx)
    return out.reshape(B, C, W, H)


def patch_forward(x, adv_patch, min_value, max_value, *, is_patch):
    """Pallas-fused equivalent of Patch.forward (including Patch.project)."""
    B, C, W, H = x.shape
    w, h, cp = adv_patch.shape
    assert cp == C, "patch channel count must match image channels"
    # Projection math is kept in f32 regardless of the image dtype.
    patch_chw = jnp.transpose(adv_patch, (2, 0, 1)).astype(jnp.float32)  # (C, w, h)
    mn = jnp.asarray(min_value, jnp.float32).reshape(C, 1, 1)
    mx = jnp.asarray(max_value, jnp.float32).reshape(C, 1, 1)
    if is_patch:
        assert w <= W and h <= H, "patch must fit inside the image"
        return _paste_forward(x, patch_chw, mn, mx, w=w, h=h)
    assert (w, h) == (W, H), "additive perturbation must match the image size"
    return _add_forward(x, patch_chw, mn, mx)


# ---------------- pure-JAX reference (mirrors the PyTorch code) ----------------
def _reference(x, adv_patch, min_value, max_value, *, is_patch):
    mn = jnp.asarray(min_value, jnp.float32).reshape(1, 1, 3)
    mx = jnp.asarray(max_value, jnp.float32).reshape(1, 1, 3)
    w, h, _ = adv_patch.shape
    p = adv_patch.astype(jnp.float32)
    p = jnp.maximum(jnp.minimum(p, mx), mn)
    p = jnp.floor((p - mn) / (mx - mn) * 255.0) / 255.0
    p = p * (mx - mn) + mn
    patch = jnp.transpose(p, (2, 0, 1))[None].astype(x.dtype)  # (1, 3, w, h)
    if is_patch:
        return x.at[:, :, :w, :h].set(
            jnp.broadcast_to(patch, (x.shape[0],) + patch.shape[1:]))
    return x + patch


if __name__ == "__main__":
    key = jax.random.PRNGKey(0)
    k1, k2, k3, k4, k5, k6 = jax.random.split(key, 6)

    min_value = (0.0 - IMAGENET_DEFAULT_MEAN) / IMAGENET_DEFAULT_STD

    # --- case 1: is_patch=True, 8x8 patch pasted into a 16x16 image ---
    B, C, W, H = 2, 3, 16, 16
    w, h = 8, 8
    adv_patch_small = jax.random.uniform(k1, (w, h, 3), dtype=jnp.float32) - 0.5
    x_small = jax.random.normal(k2, (B, C, W, H), dtype=jnp.float32)
    max_value_patch = (1.0 - IMAGENET_DEFAULT_MEAN) / IMAGENET_DEFAULT_STD

    ref1 = _reference(x_small, adv_patch_small, min_value, max_value_patch, is_patch=True)
    out1 = jax.block_until_ready(
        patch_forward(x_small, adv_patch_small, min_value, max_value_patch, is_patch=True))

    # --- case 2: is_patch=False, small 16x16 additive perturbation (eps=0.1) ---
    eps = 0.1
    max_value_eps = (eps - IMAGENET_DEFAULT_MEAN) / IMAGENET_DEFAULT_STD
    adv_small_add = jax.random.uniform(k3, (W, H, 3), dtype=jnp.float32) - 0.5
    x_small_add = jax.random.normal(k4, (B, C, W, H), dtype=jnp.float32)

    ref2 = _reference(x_small_add, adv_small_add, min_value, max_value_eps, is_patch=False)
    out2 = jax.block_until_ready(
        patch_forward(x_small_add, adv_small_add, min_value, max_value_eps, is_patch=False))

    # --- case 3: is_patch=False at the module's canonical 224x224 size ---
    W3 = H3 = 224
    adv_full = jax.random.uniform(k5, (W3, H3, 3), dtype=jnp.float32) - 0.5
    x_full = jax.random.normal(k6, (B, C, W3, H3), dtype=jnp.float32)

    ref3 = _reference(x_full, adv_full, min_value, max_value_eps, is_patch=False)
    out3 = jax.block_until_ready(
        patch_forward(x_full, adv_full, min_value, max_value_eps, is_patch=False))

    assert np.allclose(np.asarray(out1), np.asarray(ref1), atol=1e-5, rtol=1e-5)
    assert np.allclose(np.asarray(out2), np.asarray(ref2), atol=1e-5, rtol=1e-5)
    assert np.allclose(np.asarray(out3), np.asarray(ref3), atol=1e-5, rtol=1e-5)

    print("KERNEL_OK")
</pallas_src>

<mosaic_0001>
module attributes {stable_mosaic.version = 11 : i64} {
  func.func @_paste_kernel(%arg0: i32, %arg1: memref<1x3x8x16xf32, #tpu.memory_space<vmem>>, %arg2: memref<3x8x8xf32, #tpu.memory_space<vmem>>, %arg3: memref<3x1x1xf32, #tpu.memory_space<vmem>>, %arg4: memref<3x1x1xf32, #tpu.memory_space<vmem>>, %arg5: memref<1x3x8x16xf32, #tpu.memory_space<vmem>>) attributes {dimension_semantics = [#tpu.dimension_semantics<parallel>], iteration_bounds = array<i64: 2>, scalar_prefetch = 0 : i64, scratch_operands = 0 : i64, tpu.core_type = #tpu.core_type<tc>, window_params = [{transform_indices = @transform_0, window_bounds = array<i64: 1, 3, 8, 16>}, {pipeline_mode = #tpu.pipeline_mode<synchronous>, transform_indices = @transform_1, window_bounds = array<i64: 3, 8, 8>}, {pipeline_mode = #tpu.pipeline_mode<synchronous>, transform_indices = @transform_2, window_bounds = array<i64: 3, 1, 1>}, {pipeline_mode = #tpu.pipeline_mode<synchronous>, transform_indices = @transform_3, window_bounds = array<i64: 3, 1, 1>}, {transform_indices = @transform_4, window_bounds = array<i64: 1, 3, 8, 16>}]} {
    %c0 = arith.constant 0 : index
    %c0_0 = arith.constant 0 : index
    %c0_1 = arith.constant 0 : index
    %0 = vector.load %arg2[%c0, %c0_0, %c0_1] : memref<3x8x8xf32, #tpu.memory_space<vmem>>, vector<3x8x8xf32>
    %c0_2 = arith.constant 0 : index
    %c0_3 = arith.constant 0 : index
    %c0_4 = arith.constant 0 : index
    %1 = vector.load %arg3[%c0_2, %c0_3, %c0_4] : memref<3x1x1xf32, #tpu.memory_space<vmem>>, vector<3x1x1xf32>
    %c0_5 = arith.constant 0 : index
    %c0_6 = arith.constant 0 : index
    %c0_7 = arith.constant 0 : index
    %2 = vector.load %arg4[%c0_5, %c0_6, %c0_7] : memref<3x1x1xf32, #tpu.memory_space<vmem>>, vector<3x1x1xf32>
    %3 = arith.subf %2, %1 : vector<3x1x1xf32>
    %4 = vector.broadcast %2 : vector<3x1x1xf32> to vector<3x8x8xf32>
    %5 = arith.minimumf %0, %4 : vector<3x8x8xf32>
    %6 = vector.broadcast %1 : vector<3x1x1xf32> to vector<3x8x8xf32>
    %7 = arith.maximumf %5, %6 : vector<3x8x8xf32>
    %8 = vector.broadcast %1 : vector<3x1x1xf32> to vector<3x8x8xf32>
    %9 = arith.subf %7, %8 : vector<3x8x8xf32>
    %10 = vector.broadcast %3 : vector<3x1x1xf32> to vector<3x8x8xf32>
    %11 = arith.divf %9, %10 : vector<3x8x8xf32>
    %cst = arith.constant 2.550000e+02 : f32
    %12 = vector.broadcast %cst : f32 to vector<3x8x8xf32>
    %13 = arith.mulf %11, %12 : vector<3x8x8xf32>
    %14 = math.floor %13 : vector<3x8x8xf32>
    %cst_8 = arith.constant 0.00392156886 : f32
    %15 = vector.broadcast %cst_8 : f32 to vector<3x1x1xf32>
    %16 = arith.mulf %3, %15 : vector<3x1x1xf32>
    %17 = vector.broadcast %16 : vector<3x1x1xf32> to vector<3x8x8xf32>
    %18 = arith.mulf %14, %17 : vector<3x8x8xf32>
    %19 = vector.broadcast %1 : vector<3x1x1xf32> to vector<3x8x8xf32>
    %20 = arith.addf %18, %19 : vector<3x8x8xf32>
    %c0_9 = arith.constant 0 : index
    %c0_10 = arith.constant 0 : index
    %c0_11 = arith.constant 0 : index
    %c0_12 = arith.constant 0 : index
    %21 = vector.load %arg1[%c0_9, %c0_10, %c0_11, %c0_12] : memref<1x3x8x16xf32, #tpu.memory_space<vmem>>, vector<1x3x8x16xf32>
    %c0_13 = arith.constant 0 : index
    %c0_14 = arith.constant 0 : index
    %c0_15 = arith.constant 0 : index
    %c0_16 = arith.constant 0 : index
    %22 = vector.load %arg5[%c0_13, %c0_14, %c0_15, %c0_16] : memref<1x3x8x16xf32, #tpu.memory_space<vmem>>, vector<1x3x8x16xf32>
    tpu.vector_store %arg5[%c0_13, %c0_14, %c0_15, %c0_16], %21 {strides = array<i32>} : memref<1x3x8x16xf32, #tpu.memory_space<vmem>>, vector<1x3x8x16xf32>,
    %c0_17 = arith.constant 0 : index
    %c0_18 = arith.constant 0 : index
    %c0_19 = arith.constant 0 : index
    %c0_20 = arith.constant 0 : index
    %23 = vector.load %arg5[%c0_17, %c0_18, %c0_19, %c0_20] : memref<1x3x8x16xf32, #tpu.memory_space<vmem>>, vector<1x3x8x8xf32>
    %24 = vector.shape_cast %23 : vector<1x3x8x8xf32> to vector<3x8x8xf32>
    %25 = vector.shape_cast %20 : vector<3x8x8xf32> to vector<1x3x8x8xf32>
    tpu.vector_store %arg5[%c0_17, %c0_18, %c0_19, %c0_20], %25 {strides = array<i32>} : memref<1x3x8x16xf32, #tpu.memory_space<vmem>>, vector<1x3x8x8xf32>,
    return
  }
  func.func @transform_0(%arg0: i32) -> (i32, i32, i32, i32) {
    %c0_i32 = arith.constant 0 : i32
    %c0_i32_0 = arith.constant 0 : i32
    %c0_i32_1 = arith.constant 0 : i32
    %c0_i32_2 = arith.constant 0 : i32
    return %arg0, %c0_i32, %c0_i32_0, %c0_i32_1 : i32, i32, i32, i32
  }
  func.func @transform_1(%arg0: i32) -> (i32, i32, i32) {
    %c0_i32 = arith.constant 0 : i32
    %c0_i32_0 = arith.constant 0 : i32
    %c0_i32_1 = arith.constant 0 : i32
    %c0_i32_2 = arith.constant 0 : i32
    return %c0_i32, %c0_i32_0, %c0_i32_1 : i32, i32, i32
  }
  func.func @transform_2(%arg0: i32) -> (i32, i32, i32) {
    %c0_i32 = arith.constant 0 : i32
    %c0_i32_0 = arith.constant 0 : i32
    %c0_i32_1 = arith.constant 0 : i32
    %c0_i32_2 = arith.constant 0 : i32
    return %c0_i32, %c0_i32_0, %c0_i32_1 : i32, i32, i32
  }
  func.func @transform_3(%arg0: i32) -> (i32, i32, i32) {
    %c0_i32 = arith.constant 0 : i32
    %c0_i32_0 = arith.constant 0 : i32
    %c0_i32_1 = arith.constant 0 : i32
    %c0_i32_2 = arith.constant 0 : i32
    return %c0_i32, %c0_i32_0, %c0_i32_1 : i32, i32, i32
  }
  func.func @transform_4(%arg0: i32) -> (i32, i32, i32, i32) {
    %c0_i32 = arith.constant 0 : i32
    %c0_i32_0 = arith.constant 0 : i32
    %c0_i32_1 = arith.constant 0 : i32
    %c0_i32_2 = arith.constant 0 : i32
    return %arg0, %c0_i32, %c0_i32_0, %c0_i32_1 : i32, i32, i32, i32
  }
}

</mosaic_0001>

<bundles_post_ra>
// kernel: tpu_custom_call.1
= control target key start
LH: loop header
LB: loop body
LE: loop exit
PB: predicated region body
PF: predicated region fallthrough
CT: control target
= control target key end

     0   :  { %9 = vsyncpa [#allocation3], 0  ;;  %s872_s0 = inlined_call_operand.hbm [shape: f32[2,3,16,16], index: 0, kind: input, shape index: {}, may-alias: {0,4}]   ;;  %s873_s1 = inlined_call_operand.vmem [shape: f32[3,8,8], index: 1, kind: input, shape index: {}]   ;;  %s874_s2 = inlined_call_operand.vmem [shape: f32[3,1,1], index: 2, kind: input, shape index: {}]   ;;  %s875_s3 = inlined_call_operand.vmem [shape: f32[3,1,1], index: 3, kind: input, shape index: {}]   ;;  %s876_s4 = inlined_call_operand.hbm [shape: f32[2,3,16,16], index: 4, kind: output, shape index: {}, may-alias: {0,4}]  }
   0x1   :  { %11 = vsyncpa [#allocation3 + $0x1], 0 }
   0x2   :  { %12 = vsyncpa [#allocation4], 0 }
   0x3   :  { %14 = vsyncpa [#allocation4 + $0x1], 0  ;;  %s669_s15 = smov 0   ;;  %s671_s16 = smov 0  }
   0x4   :  { %s673_s17 = smov 0   ;;  %s675_s18 = smov 0  }
   0x5 LB: > { %s690_s19 = sadd.s32 4294967295, %s633_s18   ;;  %s464_s20 = sadd.s32 4294967294, %s633_s18   ;;  %s633_s18 = sphi %s675_s18, %s889_s18   ;;  %s629_s17 = sphi %s673_s17, %s888_s17   ;;  %s625_s16 = sphi %s671_s16, %s887_s16   ;;  %s621_s15 = sphi %s669_s15, %s886_s15  }
   0x6   : > { %s694_s21 = sadd.s32 1, %s633_s18   ;;  %s27_s22 = sadd.s32 1, %s629_s17 }
   0x7   : > { %s24_s23 = ssub.s32 %s633_s18, %s694_s21  ;;  %p34_p0 = scmp.ne.s32.totalorder %s629_s17, %s625_s16 }
   0x8   : > { %p25_p1 = scmp.eq.s32.totalorder %s24_s23, 0  ;;  %p35_p2 = scmp.eq.s32.totalorder %s633_s18, 0 }
   0x9   : > { %p40_p3 = scmp.ne.s32.totalorder %s625_s16, %s621_s15  ;;  %p41_p4 = scmp.eq.s32.totalorder %s690_s19, 0 }
   0xa   : > { %s706_s24 = scalar_select %p25_p1, %s629_s17, %s27_s22  }
   0xb   : > { %p36_p5 = por %p35_p2, %p34_p0  ;;  %p708_p6 = por %p41_p4, %p40_p3 }
   0xc   : > { %p127_p7 = scmp.eq.s32.totalorder %s690_s19, 1  ;;  %p133_p8 = scmp.eq.s32.totalorder %s464_s20, 1 }
   0xd   : > { %p488_p10 = scmp.lt.s32.totalorder %s633_s18, 2  ;;  %s162_s28 = sand.u32 1, %s629_s17  }
   0xe   : > { %p715_p11 = por %p127_p7, %p34_p0  ;;  %p719_p12 = por %p133_p8, %p40_p3 }
   0xf   : > { %s473_s29 = smul.u32 768, %s633_s18  ;;  %p730_p13 = pnand %p488_p10, %p36_p5 }
  0x10   : > { %s879_s26 = scalar_select %p715_p11, 1, 0 }
  0x11   : > { %s880_s27 = scalar_select %p719_p12, 1, 0 }
  0x12   : > { %s472_s30 = smul.u32 24, %s162_s28  ;;  %s728_s7 = scalar_lea.hbm %s872_s0, %s473_s29 }
  0x13   : > { %s737_s11 = scalar_lea.sflag [#allocation3], %s162_s28  ;;  %s537_s12 = scalar_lea.hbm %s728_s7, 384 }
  0x14   : > { %s166_s9 = scalar_lea.vmem [#allocation2], %s472_s30  ;;  %p538_p1 = scmp.ne.s32.totalorder %s728_s7, %s537_s12 }
  0x15   : > { %s173_s10 = sshll.u32 %s166_s9, 4  ;;  %p539_p2 = pneg %p730_p13  ;;  %s734_s10 = int_to_ptr.vmem [resolvable:$true] %s173_s10 }
  0x16   : > { %s542_s20 = scalar_lea.hbm %s872_s0, 1536  ;;  %p543_p5 = scmp.lt.u32.totalorder %s728_s7, %s872_s0 }
  0x17   : > { %p540_p3 = pnand %p539_p2, %p538_p1  ;;  %p544_p7 = scmp.lt.u32.totalorder %s542_s20, %s537_s12 }
  0x18   : > { %p546_p10 = scmp.lt.u32.totalorder %s537_s12, %s728_s7 }
  0x19   : > { %p541_p4 = pneg %p540_p3  ;;  %p545_p8 = por %p544_p7, %p543_p5 }
  0x1b   : > { %p547_p9 = por %p546_p10, %p545_p8 }
  0x1d   : > { %p548_p0 = pnand %p547_p9, %p541_p4 }
  0x1f   : > { %551 = shalt.err (!%p548_p0)
}
  0x20   : > { %s552_s28 = scalar_lea.vmem %s734_s10, 384  ;;  %s635_s29 = smov [#allocation2]  }
  0x21   : > { %p553_p1 = scmp.ne.s32.totalorder %s734_s10, %s552_s28  ;;  %s557_s30 = sshll.u32 %s635_s29, 4  ;;  %s558_s30 = int_to_ptr.vmem [resolvable:$false] %s557_s30 }
  0x22   : > { %s559_s5 = scalar_lea.vmem %s558_s30, 768  ;;  %p560_p11 = scmp.lt.s32.totalorder %s734_s10, %s558_s30 }
  0x23   : > { %p555_p3 = pnand %p553_p1, %p539_p2  ;;  %p561_p5 = scmp.lt.s32.totalorder %s559_s5, %s552_s28 }
  0x25   : > { %p556_p12 = pneg %p555_p3  ;;  %p562_p7 = por %p561_p5, %p560_p11 }
  0x27   : > { %p563_p8 = pnand %p562_p7, %p556_p12 }
  0x29   : > { %566 = shalt.err (!%p563_p8)
}
  0x2a   : > { %s636_s6 = smov 256   ;;  %s637_s9 = smov 128  }
  0x2b   : > { %s638_s12 = smov 8   ;;  %p181_p9 = scmp.lt.s32.totalorder %s633_s18, 3 }
  0x2c   : > { %483 = dma.hbm_to_vmem [thread:$0]  (!%p730_p13), %s728_s7, 384, %s734_s10, %s737_s11, %s636_s6, %s637_s9, %s638_s12  }
  0x2d   : > { %p882_p0 = scmp.ge.s32.totalorder %s633_s18, 1 }
  0x2f   : > { %p182_p2 = pnand %p882_p0, %p181_p9 }
  0x30   : > { %s769_s13 = sand.u32 (!%p182_p2), 1, %s625_s16  }
  0x31   : > { %185 = sbr.rel (%p182_p2) target bundleno = 239 (0xef), region = 36  ;;  %s188_s20 = scalar_lea.sflag (!%p182_p2), [#allocation3], %s769_s13 }
  0x32   : > { %s474_s14 = smul.u32 (!%p182_p2), 24, %s769_s13 }
  0x34   : > { %s775_s22 = scalar_lea.vmem (!%p182_p2), [#allocation2], %s474_s14 }
  0x38   : > { %612 = dma.done.wait (%p708_p6), %s188_s20, 384  }
  0x39   : > { %614 = vsyncadd (%p708_p6), %s188_s20, 4294966912  ;;  %v231_v0 = vlaneseq  ;;  %v639_v1 = vmov 0   ;;  %v223_v4 = vld [vmem:[%s875_s3 + $0x1] sm:$0x1]  ;;  %v222_v6 = vld [vmem:[%s875_s3] sm:$0x1] }
  0x3a   : > { %530 = vset.pattern.permute.xlu0 %v639_v1  ;;  %529 = vset.pattern.permute.xlu1 %v639_v1  ;;  %v220_v5 = vld [vmem:[%s874_s2 + $0x1] sm:$0x1]  ;;  %v219_v9 = vld [vmem:[%s874_s2] sm:$0x1]  ;;  %v221_v10 = vld [vmem:[%s874_s2 + $0x2] sm:$0x1] }
  0x3b   : > { %v232_v2 = vshrl.u32 %v231_v0, 7  ;;  %v224_v11 = vld [vmem:[%s875_s3 + $0x2] sm:$0x1]  ;;  %v225_v12 = vsub.f32 %v222_v6, %v219_v9  ;;  %v226_v14 = vsub.f32 %v223_v4, %v220_v5  ;;  %vm369_vm0 = vcmask 130048   ;;  %s802_s12 = scalar_lea.vmem [#allocation5], %s474_s14  ;;  %v368_v29 = vld [vmem:[%s775_s22 + $0x10] sm:$0xff] }
  0x3c   : > { %v227_v13 = vsub.f32 %v224_v11, %v221_v10  ;;  %v366_v26 = vld [vmem:[%s775_s22] sm:$0xff]  ;;  %372 = vst.msk [vmem:[%s802_s12 + $0x10] sm:$0xff] %vm369_vm0, %v368_v29  ;;  %v367_v30 = vld [vmem:[%s775_s22 + $0x8] sm:$0xff]  ;;  %v218_v41 = vld [vmem:[%s873_s1 + $0x10] sm:$0xff]  ;;  %s475_s11 = smul.u32 768, %s690_s19  ;;  %vm373_vm1 = vcmask 64512  }
  0x3d   : > { %v233_v3 = vsub.s32 0, %v232_v2  ;;  %v330_v19 = vmul.f32 0.003921569, %v225_v12  ;;  %v331_v22 = vmul.f32 0.003921569, %v226_v14  ;;  %370 = vst.msk [vmem:[%s802_s12] sm:$0xff] %vm369_vm0, %v366_v26 }
  0x3e   : > { %v332_v25 = vmul.f32 0.003921569, %v227_v13  ;;  %371 = vst.msk [vmem:[%s802_s12 + $0x8] sm:$0xff] %vm369_vm0, %v367_v30  ;;  %v216_v35 = vld [vmem:[%s873_s1] sm:$0xff]  ;;  %v217_v38 = vld [vmem:[%s873_s1 + $0x8] sm:$0xff]  ;;  %s391_s23 = sshll.u32 %s802_s12, 4  ;;  %s824_s29 = scalar_lea.hbm %s876_s4, %s475_s11  ;;  %s826_s23 = int_to_ptr.vmem [resolvable:$true] %s391_s23 }
  0x3f   : > { %v238_v7 = vrot.slane %v223_v4, %v233_v3  ;;  %v234_v8 = vrot.slane %v222_v6, %v233_v3  ;;  %v305_v15 = vrot.slane %v227_v13, %v233_v3  ;;  %v297_v16 = vrot.slane %v225_v12, %v233_v3  ;;  %s378_s19 = scalar_lea.sflag [#allocation4], %s769_s13  ;;  %s567_s30 = scalar_lea.vmem %s826_s23, 384 }
  0x40   : > { %v242_v17 = vrot.slane %v224_v11, %v233_v3  ;;  %v301_v18 = vrot.slane %v226_v14, %v233_v3  ;;  %v268_v20 = vrot.slane %v220_v5, %v233_v3  ;;  %v264_v21 = vrot.slane %v219_v9, %v233_v3  ;;  %p568_p6 = scmp.ne.s32.totalorder %s826_s23, %s567_s30  ;;  %p883_p11 = scmp.ne.s32.totalorder %s879_s26, 0 }
  0x41   : > { %248 = vperm.xlu0 %530, %v238_v7   ;;  %244 = vperm.xlu1 %529, %v234_v8   ;;  %v339_v23 = vrot.slane %v330_v19, %v233_v3  ;;  %v272_v24 = vrot.slane %v221_v10, %v233_v3  ;;  %v347_v27 = vrot.slane %v332_v25, %v233_v3  ;;  %s640_s5 = smov [#allocation5]  }
  0x42   : > { %v343_v28 = vrot.slane %v331_v22, %v233_v3  ;;  %p569_p12 = pnand %p568_p6, %p883_p11  ;;  %s571_s6 = sshll.u32 %s640_s5, 4  ;;  %s572_s6 = int_to_ptr.vmem [resolvable:$false] %s571_s6 }
  0x43   : > { %s573_s9 = scalar_lea.vmem %s572_s6, 768  ;;  %p574_p4 = scmp.lt.s32.totalorder %s826_s23, %s572_s6 }
  0x44   : > { %p570_p13 = pneg %p569_p12  ;;  %p575_p10 = scmp.lt.s32.totalorder %s573_s9, %s567_s30 }
  0x45   : > { %315 = vperm.xlu1 %529, %v305_v15   ;;  %307 = vperm.xlu0 %530, %v297_v16  }
  0x46   : > { %p576_p1 = por %p575_p10, %p574_p4 }
  0x48   : > { %p577_p3 = pnand %p576_p1, %p570_p13 }
  0x49   : > { %252 = vperm.xlu1 %529, %v242_v17   ;;  %311 = vperm.xlu0 %530, %v301_v18  }
  0x4d   : > { %278 = vperm.xlu1 %529, %v268_v20   ;;  %274 = vperm.xlu0 %530, %v264_v21  }
  0x51   : > { %349 = vperm.xlu1 %529, %v339_v23   ;;  %282 = vperm.xlu0 %530, %v272_v24  }
  0x55   : > { %357 = vperm.xlu1 %529, %v347_v27   ;;  %353 = vperm.xlu0 %530, %v343_v28  }
  0xc0   : > { %v249_v31 = vpop.permute.xlu0 %248  ;;  %v245_v32 = vpop.permute.xlu1 %244 }
  0xc1   : > { %v255_v39 = vmin.f32 %v216_v35, %v245_v32  ;;  %v256_v40 = vmin.f32 %v217_v38, %v249_v31 }
  0xc4   : > { %v316_v33 = vpop.permute.xlu1 %315  ;;  %v308_v34 = vpop.permute.xlu0 %307 }
  0xc5   : > { %531 = vrcp.f32 %v308_v34 }
  0xc8   : > { %v253_v36 = vpop.permute.xlu1 %252  ;;  %v312_v37 = vpop.permute.xlu0 %311 }
  0xc9   : > { %533 = vrcp.f32 %v312_v37  ;;  %v257_v46 = vmin.f32 %v218_v41, %v253_v36 }
  0xca   : > { %535 = vrcp.f32 %v316_v33 }
  0xcc   : > { %v279_v42 = vpop.permute.xlu1 %278  ;;  %v275_v43 = vpop.permute.xlu0 %274 }
  0xcd   : > { %v285_v44 = vmax.f32 %v255_v39, %v275_v43  ;;  %v286_v45 = vmax.f32 %v256_v40, %v279_v42 }
  0xcf   : > { %v288_v47 = vsub.f32 %v285_v44, %v275_v43  ;;  %v532_v48 = vpop.eup %531  ;;  %v289_v52 = vsub.f32 %v286_v45, %v279_v42 }
  0xd0   : > { %v283_v49 = vpop.permute.xlu0 %282  ;;  %v350_v57 = vpop.permute.xlu1 %349 }
  0xd1   : > { %v319_v50 = vmul.f32 %v532_v48, %v288_v47  ;;  %v287_v51 = vmax.f32 %v257_v46, %v283_v49 }
  0xd3   : > { %v534_v53 = vpop.eup %533  ;;  %v324_v54 = vmul.f32 255.0, %v319_v50  ;;  %v290_v55 = vsub.f32 %v287_v51, %v283_v49 }
  0xd4   : > { %v536_v56 = vpop.eup %535  ;;  %v321_v58 = vmul.f32 %v534_v53, %v289_v52  ;;  %v354_v3 = vpop.permute.xlu0 %353 }
  0xd5   : > { %v327_v59 = vfloor.f32 %v324_v54  ;;  %v323_v60 = vmul.f32 %v536_v56, %v290_v55  ;;  %v358_v4 = vpop.permute.xlu1 %357 }
  0xd6   : > { %v325_v61 = vmul.f32 255.0, %v321_v58 }
  0xd7   : > { %v360_v62 = vmul.f32 %v350_v57, %v327_v59  ;;  %v326_v63 = vmul.f32 255.0, %v323_v60 }
  0xd8   : > { %v328_v0 = vfloor.f32 %v325_v61 }
  0xd9   : > { %v363_v1 = vadd.f32 %v360_v62, %v275_v43  ;;  %v329_v2 = vfloor.f32 %v326_v63 }
  0xda   : > { %v361_v5 = vmul.f32 %v354_v3, %v328_v0 }
  0xdb   : > { %374 = vst.msk [vmem:[%s802_s12] sm:$0xff] %vm373_vm1, %v363_v1  ;;  %v362_v6 = vmul.f32 %v358_v4, %v329_v2 }
  0xdc   : > { %v364_v7 = vadd.f32 %v361_v5, %v279_v42 }
  0xdd   : > { %v365_v8 = vadd.f32 %v362_v6, %v283_v49 }
  0xde   : > { %375 = vst.msk [vmem:[%s802_s12 + $0x8] sm:$0xff] %vm373_vm1, %v364_v7 }
  0xdf   : > { %376 = vst.msk [vmem:[%s802_s12 + $0x10] sm:$0xff] %vm373_vm1, %v365_v8 }
  0xe0   : > { %580 = shalt.err (!%p577_p3)
}
  0xe1   : > { %s581_s12 = scalar_lea.hbm %s824_s29, 384  ;;  %s585_s7 = scalar_lea.hbm %s876_s4, 1536 }
  0xe2   : > { %p582_p5 = scmp.ne.s32.totalorder %s824_s29, %s581_s12  ;;  %p586_p9 = scmp.lt.u32.totalorder %s824_s29, %s876_s4 }
  0xe3   : > { %p587_p0 = scmp.lt.u32.totalorder %s585_s7, %s581_s12  ;;  %p589_p6 = scmp.lt.u32.totalorder %s581_s12, %s824_s29 }
  0xe4   : > { %p583_p7 = pnand %p582_p5, %p883_p11 }
  0xe5   : > { %p588_p2 = por %p587_p0, %p586_p9 }
  0xe6   : > { %p584_p8 = pneg %p583_p7 }
  0xe7   : > { %p590_p12 = por %p589_p6, %p588_p2 }
  0xe9   : > { %p591_p13 = pnand %p590_p12, %p584_p8 }
  0xeb   : > { %594 = shalt.err (!%p591_p13)
}
  0xec   : > { %s641_s10 = smov 128   ;;  %s642_s11 = smov 256  }
  0xed   : > { %s643_s28 = smov 8  }
  0xee   : > { %478 = dma.vmem_to_hbm [thread:$0]  (%p883_p11), %s826_s23, 384, %s824_s29, %s378_s19, %s641_s10, %s642_s11, %s643_s28  }
  0xef PF: > { %s406_s25 = sand.u32 1, %s621_s15   ;;  %p884_p4 = scmp.ne.s32.totalorder %s880_s27, 0 }
  0xf0   : > { %p885_p10 = scmp.ge.s32.totalorder %s633_s18, 2  ;;  %s407_s30 = scalar_lea.sflag [#allocation4], %s406_s25 }
  0xf2   : > { %p485_p1 = pnand %p885_p10, %p884_p4 }
  0xf4   : > { %616 = dma.done.wait (!%p485_p1), %s407_s30, 384  }
  0xf5   : > { %618 = vsyncadd (!%p485_p1), %s407_s30, 4294966912  ;;  %p17_p3 = scmp.ge.s32.totalorder %s694_s21, 4   ;;  %s886_s15 = smov %s625_s16 }
  0xf6   : > { %s887_s16 = smov %s629_s17  ;;  %s888_s17 = smov %s706_s24 }
  0xf7   : > { %s889_s18 = smov %s694_s21  ;;  %19 = sbr.rel (!%p17_p3) target bundleno = 5 (0x5), region = 81 }
  0xfe   :  { %412 = vsyncpa [#allocation3], 1 }
  0xff   :  { %414 = vsyncpa [#allocation3 + $0x1], 1 }
 0x100   :  { %415 = vsyncpa [#allocation4], 1 }
 0x101   :  { %417 = vsyncpa [#allocation4 + $0x1], 1 }

</bundles_post_ra>
